<compile_context>
chip_gen: v5e
topology: v5e:2x2
jax: 0.10.0
libtpu: 0.0.40
codegen_flags: <defaults>
</compile_context>

<pallas_src>
import functools

import jax
import jax.numpy as jnp
from jax.experimental import pallas as pl
from jax.experimental.pallas import tpu as pltpu


def _round_up(x, m):
    return (x + m - 1) // m * m


# ---------------------------------------------------------------------------
# Fused MLP kernel (chain of Linear [+ ReLU] layers) on one batch tile.
# refs = (x_ref, w0, b0, w1, b1, ..., o_ref)
# ---------------------------------------------------------------------------
def _mlp_chain_kernel(*refs, num_layers, relu_flags):
    x_ref = refs[0]
    o_ref = refs[-1]
    param_refs = refs[1:-1]

    h = x_ref[...]
    for i in range(num_layers):
        w = param_refs[2 * i][...]          # (in_i, out_i), storage dtype
        b = param_refs[2 * i + 1][...]      # (1, out_i), f32
        # Cast activations to the weight dtype (no-op for f32 weights); the MXU
        # accumulates in f32 regardless.
        h = jnp.dot(h.astype(w.dtype), w, preferred_element_type=jnp.float32) + b
        if relu_flags[i]:
            h = jnp.maximum(h, 0.0)
        if i < num_layers - 1:
            # Keep the live inter-layer activation in the storage dtype (bf16 by
            # default) to halve vst/vld pressure between layers.
            h = h.astype(w.dtype)
    o_ref[...] = h.astype(o_ref.dtype)


def _fused_mlp(x, layers, relu_flags, *, batch_tile, out_dim):
    """x: (B, in_dim) — unpadded.  layers: [(W, b)] with W (in_i, out_i), b (1, out_i).

    Returns (B, out_dim) f32.
    """
    B, in_dim = x.shape
    num_layers = len(layers)
    tb = batch_tile                         # multiple of 8, <= round_up(B, 8)
    grid = (pl.cdiv(B, tb),)                # partial trailing block handled by Pallas

    flat_params = []
    for w, b in layers:
        flat_params.append(w)
        flat_params.append(b)

    in_specs = [pl.BlockSpec((tb, in_dim), lambda i: (i, 0))]
    for p in flat_params:
        # Full-array block, constant block index across the whole grid (the
        # pipeliner only DMAs it once).
        # TODO(synk): single-buffer these constant blocks via
        # pipeline_mode=pl.Buffered(1) once verified on-target; weights are only
        # a few hundred KiB so the double-buffer VMEM cost is negligible here.
        in_specs.append(pl.BlockSpec(p.shape, lambda i: (0, 0)))

    out_specs = pl.BlockSpec((tb, out_dim), lambda i: (i, 0))

    # Advisory cost estimate so XLA schedules the custom call sensibly.
    flops = 2 * B * sum(w.shape[0] * w.shape[1] for w, _ in layers)
    bytes_accessed = (
        x.size * x.dtype.itemsize
        + sum(p.size * p.dtype.itemsize for p in flat_params)
        + B * out_dim * 4
    )
    cost = pl.CostEstimate(flops=flops, transcendentals=0,
                           bytes_accessed=bytes_accessed)

    kernel = functools.partial(
        _mlp_chain_kernel, num_layers=num_layers, relu_flags=tuple(relu_flags)
    )

    # NOTE: for very large batch tiles (tb >= 2048) on v5e, set
    # vmem_limit_bytes explicitly (v5e scoped default is 16 MiB).  At the
    # default tb<=1024 total VMEM use is a few MiB, well under every default.
    return pl.pallas_call(
        kernel,
        out_shape=jax.ShapeDtypeStruct((B, out_dim), jnp.float32),
        grid_spec=pltpu.PrefetchScalarGridSpec(
            num_scalar_prefetch=0,
            grid=grid,
            in_specs=in_specs,
            out_specs=out_specs,
        ),
        compiler_params=pltpu.CompilerParams(
            dimension_semantics=("parallel",)
        ),
        cost_estimate=cost,
    )(x, *flat_params)


# ---------------------------------------------------------------------------
# DynamicsModel: parameter construction + forward via the fused Pallas kernel.
# ---------------------------------------------------------------------------
class DynamicsModel:
    def __init__(self, input_dim, output_dim, hidden_dim, net_type=1, *,
                 key, batch_tile=512, use_bf16=True):
        self.net_type = net_type
        self.input_dim = input_dim
        self.output_dim = output_dim
        # Batch-tile default 512: sized for per-grid-step overhead amortization
        # and HBM streaming (the kernel is mem/overhead-bound), not MXU fill.
        # Sweep 512-1024 for very large rollout batches.
        self.batch_tile = int(batch_tile)
        self.param_dtype = jnp.bfloat16 if use_bf16 else jnp.float32

        def linear_init(k, fan_in, fan_out):
            # Mirrors PyTorch nn.Linear default init:
            # uniform in [-1/sqrt(fan_in), 1/sqrt(fan_in)].
            kw, kb = jax.random.split(k)
            bound = 1.0 / jnp.sqrt(jnp.float32(fan_in))
            w = jax.random.uniform(kw, (fan_in, fan_out), jnp.float32, -bound, bound)
            b = jax.random.uniform(kb, (fan_out,), jnp.float32, -bound, bound)
            return w, b

        keys = jax.random.split(key, 4)
        fc1 = linear_init(keys[0], input_dim, hidden_dim)
        if net_type == 2:
            fc2 = linear_init(keys[1], hidden_dim, 256)
            fc3 = linear_init(keys[2], 256, 256)
            fc5 = linear_init(keys[3], 256, output_dim)
            chain = [fc1, fc2, fc3, fc5]
            relu = [True, True, True, False]
        elif net_type == 0:
            # Matches torch module: fc3 = Linear(128, 128).  The chain only
            # type-checks when hidden_dim == 128 (same as the original code).
            if hidden_dim != 128:
                raise ValueError("net_type=0 requires hidden_dim == 128 "
                                 "(fc3 is hard-coded Linear(128, 128))")
            fc2 = linear_init(keys[1], hidden_dim, output_dim)
            fc3 = linear_init(keys[2], 128, 128)
            chain = [fc1, fc3, fc2]
            relu = [True, True, False]
        elif net_type == 1:
            fc2 = linear_init(keys[1], hidden_dim, output_dim)
            chain = [fc1, fc2]
            relu = [True, False]
        else:
            raise ValueError("unsupported net_type")

        self._layers_raw = chain          # unpadded f32 params (reference path)
        self._relu = relu

        # Zero-pad ONLY the intermediate feature dims to multiples of 128 so
        # inter-layer activations / matmul operands are lane-dense.  The first
        # layer keeps its true input width (no x lane-pad in HBM) and the last
        # layer keeps the true output width (output written directly as
        # (B, output_dim)).  Zero padding keeps the forward math exact.
        padded = []
        n = len(chain)
        for idx, (w, b) in enumerate(chain):
            fi, fo = w.shape
            fi_p = fi if idx == 0 else _round_up(fi, 128)
            fo_p = fo if idx == n - 1 else _round_up(fo, 128)
            w_p = jnp.zeros((fi_p, fo_p), jnp.float32).at[:fi, :fo].set(w)
            b_p = jnp.zeros((1, fo_p), jnp.float32).at[0, :fo].set(b)
            padded.append((w_p.astype(self.param_dtype), b_p))  # bias stays f32
        self._layers = padded

    def _pick_tile(self, B):
        b8 = _round_up(B, 8)
        # Round user batch_tile down to a multiple of 8 instead of asserting.
        tb = max(8, (self.batch_tile // 8) * 8)
        tb = min(tb, b8)
        # v7x has 2 TensorCores; for decent-sized batches make sure the
        # "parallel" batch axis has >= 2 grid steps so both cores get work.
        if b8 >= 256 and pl.cdiv(B, tb) < 2:
            tb = _round_up(pl.cdiv(b8, 2), 8)
        return tb

    def forward(self, x):
        B, d = x.shape
        assert d == self.input_dim, (d, self.input_dim)
        tb = self._pick_tile(B)
        # No wrapper-side pad / cast / slice: x goes to the kernel as-is (the
        # kernel casts to the storage dtype in-VMEM), the output comes back as
        # (B, output_dim) f32 directly.
        return _fused_mlp(x, self._layers, self._relu,
                          batch_tile=tb, out_dim=self.output_dim)

    def forward_ref(self, x):
        # Pure-JAX f32 reference (unpadded params) for correctness checking.
        h = x
        for (w, b), r in zip(self._layers_raw, self._relu):
            h = h @ w + b
            if r:
                h = jnp.maximum(h, 0.0)
        return h


if __name__ == "__main__":
    key = jax.random.PRNGKey(0)
    k_param, k_param2, k_x = jax.random.split(key, 3)

    # Hopper-like dims: obs(11) + action(3) -> next obs(11), hidden 32.
    batch, input_dim, output_dim, hidden_dim = 16, 14, 11, 32
    x = jax.random.normal(k_x, (batch, input_dim), jnp.float32)

    # net_type = 1, exact f32 storage path: matches the reference to 1e-5.
    model1 = DynamicsModel(input_dim, output_dim, hidden_dim, net_type=1,
                           key=k_param, use_bf16=False)
    out1 = model1.forward(x)
    jax.block_until_ready(out1)
    ref1 = model1.forward_ref(x)
    assert out1.shape == (batch, output_dim)
    assert jnp.allclose(out1, ref1, atol=1e-5, rtol=1e-5)

    # net_type = 2 (deeper chain) with the default bf16 weight/activation
    # storage (f32 bias + f32 accumulation): expect ~1e-2 relative error vs the
    # f32 reference, so use a correspondingly loose tolerance.
    model2 = DynamicsModel(input_dim, output_dim, hidden_dim, net_type=2,
                           key=k_param2)
    out2 = model2.forward(x)
    jax.block_until_ready(out2)
    ref2 = model2.forward_ref(x)
    assert out2.shape == (batch, output_dim)
    assert jnp.allclose(out2, ref2, atol=5e-2, rtol=5e-2)

    print("KERNEL_OK")
</pallas_src>

<mosaic_0001>
module attributes {stable_mosaic.version = 11 : i64} {
  func.func @_mlp_chain_kernel(%arg0: i32, %arg1: memref<16x14xf32, #tpu.memory_space<vmem>>, %arg2: memref<14x128xf32, #tpu.memory_space<vmem>>, %arg3: memref<1x128xf32, #tpu.memory_space<vmem>>, %arg4: memref<128x11xf32, #tpu.memory_space<vmem>>, %arg5: memref<1x11xf32, #tpu.memory_space<vmem>>, %arg6: memref<16x11xf32, #tpu.memory_space<vmem>>) attributes {dimension_semantics = [#tpu.dimension_semantics<parallel>], iteration_bounds = array<i64: 1>, scalar_prefetch = 0 : i64, scratch_operands = 0 : i64, tpu.core_type = #tpu.core_type<tc>, window_params = [{transform_indices = @transform_0, window_bounds = array<i64: 16, 14>}, {pipeline_mode = #tpu.pipeline_mode<synchronous>, transform_indices = @transform_1, window_bounds = array<i64: 14, 128>}, {pipeline_mode = #tpu.pipeline_mode<synchronous>, transform_indices = @transform_2, window_bounds = array<i64: 1, 128>}, {pipeline_mode = #tpu.pipeline_mode<synchronous>, transform_indices = @transform_3, window_bounds = array<i64: 128, 11>}, {pipeline_mode = #tpu.pipeline_mode<synchronous>, transform_indices = @transform_4, window_bounds = array<i64: 1, 11>}, {transform_indices = @transform_5, window_bounds = array<i64: 16, 11>}]} {
    %c0 = arith.constant 0 : index
    %c0_0 = arith.constant 0 : index
    %0 = vector.load %arg1[%c0, %c0_0] : memref<16x14xf32, #tpu.memory_space<vmem>>, vector<16x14xf32>
    %c0_1 = arith.constant 0 : index
    %c0_2 = arith.constant 0 : index
    %1 = vector.load %arg2[%c0_1, %c0_2] : memref<14x128xf32, #tpu.memory_space<vmem>>, vector<14x128xf32>
    %c0_3 = arith.constant 0 : index
    %c0_4 = arith.constant 0 : index
    %2 = vector.load %arg3[%c0_3, %c0_4] : memref<1x128xf32, #tpu.memory_space<vmem>>, vector<1x128xf32>
    %cst = arith.constant dense<0.000000e+00> : vector<16x128xf32>
    %3 = tpu.matmul %0, %1, %cst {dimension_numbers = #tpu.dot_dimension_numbers<[1], [0], [0], [1], [0, 0, 1, 1], [], []>} : vector<16x14xf32>, vector<14x128xf32>, vector<16x128xf32> -> vector<16x128xf32>
    %4 = vector.broadcast %2 : vector<1x128xf32> to vector<16x128xf32>
    %5 = arith.addf %3, %4 : vector<16x128xf32>
    %cst_5 = arith.constant 0.000000e+00 : f32
    %6 = vector.broadcast %cst_5 : f32 to vector<16x128xf32>
    %7 = arith.maximumf %5, %6 : vector<16x128xf32>
    %c0_6 = arith.constant 0 : index
    %c0_7 = arith.constant 0 : index
    %8 = vector.load %arg4[%c0_6, %c0_7] : memref<128x11xf32, #tpu.memory_space<vmem>>, vector<128x11xf32>
    %c0_8 = arith.constant 0 : index
    %c0_9 = arith.constant 0 : index
    %9 = vector.load %arg5[%c0_8, %c0_9] : memref<1x11xf32, #tpu.memory_space<vmem>>, vector<1x11xf32>
    %cst_10 = arith.constant dense<0.000000e+00> : vector<16x11xf32>
    %10 = tpu.matmul %7, %8, %cst_10 {dimension_numbers = #tpu.dot_dimension_numbers<[1], [0], [0], [1], [0, 0, 1, 1], [], []>} : vector<16x128xf32>, vector<128x11xf32>, vector<16x11xf32> -> vector<16x11xf32>
    %11 = vector.broadcast %9 : vector<1x11xf32> to vector<16x11xf32>
    %12 = arith.addf %10, %11 : vector<16x11xf32>
    %c0_11 = arith.constant 0 : index
    %c0_12 = arith.constant 0 : index
    %13 = vector.load %arg6[%c0_11, %c0_12] : memref<16x11xf32, #tpu.memory_space<vmem>>, vector<16x11xf32>
    tpu.vector_store %arg6[%c0_11, %c0_12], %12 {strides = array<i32>} : memref<16x11xf32, #tpu.memory_space<vmem>>, vector<16x11xf32>,
    return
  }
  func.func @transform_0(%arg0: i32) -> (i32, i32) {
    %c0_i32 = arith.constant 0 : i32
    %c0_i32_0 = arith.constant 0 : i32
    return %arg0, %c0_i32 : i32, i32
  }
  func.func @transform_1(%arg0: i32) -> (i32, i32) {
    %c0_i32 = arith.constant 0 : i32
    %c0_i32_0 = arith.constant 0 : i32
    %c0_i32_1 = arith.constant 0 : i32
    return %c0_i32, %c0_i32_0 : i32, i32
  }
  func.func @transform_2(%arg0: i32) -> (i32, i32) {
    %c0_i32 = arith.constant 0 : i32
    %c0_i32_0 = arith.constant 0 : i32
    %c0_i32_1 = arith.constant 0 : i32
    return %c0_i32, %c0_i32_0 : i32, i32
  }
  func.func @transform_3(%arg0: i32) -> (i32, i32) {
    %c0_i32 = arith.constant 0 : i32
    %c0_i32_0 = arith.constant 0 : i32
    %c0_i32_1 = arith.constant 0 : i32
    return %c0_i32, %c0_i32_0 : i32, i32
  }
  func.func @transform_4(%arg0: i32) -> (i32, i32) {
    %c0_i32 = arith.constant 0 : i32
    %c0_i32_0 = arith.constant 0 : i32
    %c0_i32_1 = arith.constant 0 : i32
    return %c0_i32, %c0_i32_0 : i32, i32
  }
  func.func @transform_5(%arg0: i32) -> (i32, i32) {
    %c0_i32 = arith.constant 0 : i32
    %c0_i32_0 = arith.constant 0 : i32
    return %arg0, %c0_i32 : i32, i32
  }
}

</mosaic_0001>

<bundles_post_ra>
// kernel: tpu_custom_call.1
= control target key start
LH: loop header
LB: loop body
LE: loop exit
PB: predicated region body
PF: predicated region fallthrough
CT: control target
= control target key end

     0   :  { %vm36_vm0 = vcmask 1045504   ;;  %vm29_vm1 = vcmask 113664   ;;  %s283_s0 = inlined_call_operand.vmem [shape: f32[16,14], index: 0, kind: input, shape index: {}]   ;;  %s284_s1 = inlined_call_operand.vmem [shape: f32[14,128], index: 1, kind: input, shape index: {}]   ;;  %s285_s2 = inlined_call_operand.vmem [shape: f32[1,128], index: 2, kind: input, shape index: {}]   ;;  %s286_s3 = inlined_call_operand.vmem [shape: f32[128,11], index: 3, kind: input, shape index: {}]   ;;  %s287_s4 = inlined_call_operand.vmem [shape: f32[1,11], index: 4, kind: input, shape index: {}]   ;;  %s288_s5 = inlined_call_operand.hbm [shape: f32[16,11], index: 5, kind: output, shape index: {}]  }
   0x1   :  { %v24_v0 = vld [vmem:[%s284_s1 + $0x8] sm:$0x3f]  ;;  %v23_v1 = vld [vmem:[%s284_s1] sm:$0xff]  ;;  %v80_v3 = vld [vmem:[%s286_s3 + $0x78] sm:$0xff] }
   0x2   :  { %129 = vmatpush.msk.msra.mxu0 %vm36_vm0, %v24_v0  ;;  %v21_v2 = vld [vmem:[%s283_s0] sm:$0xff]  ;;  %v79_v4 = vld [vmem:[%s286_s3 + $0x70] sm:$0xff]  ;;  %85 = vmatpush.msra.mxu1 %v80_v3  ;;  %v78_v5 = vld [vmem:[%s286_s3 + $0x68] sm:$0xff] }
   0x3   :  { %132 = vmatpush.msra.mxu2 %v80_v3  ;;  %v77_v6 = vld [vmem:[%s286_s3 + $0x60] sm:$0xff] }
   0x4   :  { %55 = vmatpush.msra.mxu0 %v23_v1  ;;  %86 = vmatpush.msra.mxu1 %v79_v4 }
   0x5   :  { %130 = vmatmul.msk.f32.vlgmr.msra.gmra.mxu0 %vm29_vm1, %v21_v2  ;;  %133 = vmatpush.msra.mxu2 %v79_v4 }
   0x6   :  { %87 = vmatpush.msra.mxu1 %v78_v5 }
   0x7   :  { %10 = vsyncpa [#allocation3], 0  ;;  %v76_v7 = vld [vmem:[%s286_s3 + $0x58] sm:$0xff]  ;;  %134 = vmatpush.msra.mxu2 %v78_v5  ;;  %v22_v8 = vld [vmem:[%s283_s0 + $0x8] sm:$0xff]  ;;  %vm108_vm2 = vcmask 89088   ;;  %s117_s11 = sshll.u32 %s288_s5, 4  ;;  %s118_s11 = int_to_ptr.hbm [resolvable:$true] %s117_s11 }
   0x8   :  { %88 = vmatpush.msra.mxu1 %v77_v6  ;;  %v75_v9 = vld [vmem:[%s286_s3 + $0x50] sm:$0xff]  ;;  %v74_v10 = vld [vmem:[%s286_s3 + $0x48] sm:$0xff]  ;;  %v73_v11 = vld [vmem:[%s286_s3 + $0x40] sm:$0xff]  ;;  %s180_s12 = smov 128   ;;  %s181_s13 = smov 8  }
   0x9   :  { %135 = vmatpush.msra.mxu2 %v77_v6  ;;  %v72_v12 = vld [vmem:[%s286_s3 + $0x38] sm:$0xff]  ;;  %v71_v13 = vld [vmem:[%s286_s3 + $0x30] sm:$0xff]  ;;  %v70_v14 = vld [vmem:[%s286_s3 + $0x28] sm:$0xff] }
   0xa   :  { %89 = vmatpush.msra.mxu1 %v76_v7  ;;  %v69_v15 = vld [vmem:[%s286_s3 + $0x20] sm:$0xff]  ;;  %v68_v16 = vld [vmem:[%s286_s3 + $0x18] sm:$0xff]  ;;  %v67_v17 = vld [vmem:[%s286_s3 + $0x10] sm:$0xff] }
   0xb   :  { %136 = vmatpush.msra.mxu2 %v76_v7  ;;  %v66_v18 = vld [vmem:[%s286_s3 + $0x8] sm:$0xff]  ;;  %v65_v19 = vld [vmem:[%s286_s3] sm:$0xff]  ;;  %s179_s3 = smov [#allocation2]  }
   0xc   :  { %90 = vmatpush.msra.mxu1 %v75_v9  ;;  %v151_v20 = vld [vmem:[%s285_s2] ss:$0 sm:$0xff]  ;;  %s115_s9 = sshll.u32 %s179_s3, 4  ;;  %s116_s9 = int_to_ptr.vmem [resolvable:$true] %s115_s9 }
   0xd   :  { %131 = vmatmul.msk.f32.gmra.mxu0 %vm29_vm1, %v22_v8  ;;  %137 = vmatpush.msra.mxu2 %v75_v9  ;;  %v152_v27 = vld [vmem:[%s287_s4] ss:$0 sm:$0xff] }
   0xe   :  { %91 = vmatpush.msra.mxu1 %v74_v10 }
   0xf   :  { %138 = vmatpush.msra.mxu2 %v74_v10 }
  0x10   :  { %92 = vmatpush.msra.mxu1 %v73_v11 }
  0x11   :  { %139 = vmatpush.msra.mxu2 %v73_v11 }
  0x12   :  { %93 = vmatpush.msra.mxu1 %v72_v12 }
  0x13   :  { %140 = vmatpush.msra.mxu2 %v72_v12 }
  0x14   :  { %94 = vmatpush.msra.mxu1 %v71_v13 }
  0x15   :  { %141 = vmatpush.msra.mxu2 %v71_v13 }
  0x16   :  { %95 = vmatpush.msra.mxu1 %v70_v14 }
  0x17   :  { %142 = vmatpush.msra.mxu2 %v70_v14 }
  0x18   :  { %96 = vmatpush.msra.mxu1 %v69_v15 }
  0x19   :  { %143 = vmatpush.msra.mxu2 %v69_v15 }
  0x1a   :  { %97 = vmatpush.msra.mxu1 %v68_v16 }
  0x1b   :  { %144 = vmatpush.msra.mxu2 %v68_v16 }
  0x1c   :  { %98 = vmatpush.msra.mxu1 %v67_v17 }
  0x1d   :  { %145 = vmatpush.msra.mxu2 %v67_v17 }
  0x1e   :  { %99 = vmatpush.msra.mxu1 %v66_v18 }
  0x1f   :  { %146 = vmatpush.msra.mxu2 %v66_v18 }
  0x20   :  { %100 = vmatpush.msra.mxu1 %v65_v19 }
  0x21   :  { %147 = vmatpush.msra.mxu2 %v65_v19 }
  0x82   :  { %v57_v21 = vpop.f32.mrf.mxu0 }
  0x83   :  { %v58_v22 = vadd.f32 %v151_v20, %v57_v21 }
  0x85   :  { %v63_v23 = vmax.f32 %v58_v22, 0.0 }
  0x87   :  { %101 = vmatmul.f32.vlgmr.msra.gmra.mxu1 %v63_v23 }
  0x8a   :  { %v60_v24 = vpop.f32.mrf.mxu0 }
  0x8b   :  { %v61_v25 = vadd.f32 %v151_v20, %v60_v24 }
  0x8d   :  { %v64_v26 = vmax.f32 %v61_v25, 0.0 }
  0x8f   :  { %104 = vmatmul.f32.vlgmr.msra.gmra.mxu2 %v64_v26 }
 0x104   :  { %v102_v28 = vpop.f32.mrf.mxu1 }
 0x105   :  { %v103_v29 = vadd.f32 %v152_v27, %v102_v28 }
 0x107   :  { %109 = vst.msk [vmem:[#allocation2] sm:$0xff] %vm108_vm2, %v103_v29 }
 0x112   :  { %v105_v30 = vpop.f32.mrf.mxu2 }
 0x113   :  { %v106_v31 = vadd.f32 %v152_v27, %v105_v30 }
 0x115   :  { %110 = vst.msk [vmem:[#allocation2 + $0x8] sm:$0xff] %vm108_vm2, %v106_v31 }
 0x116   :  { %123 = dma.vmem_to_hbm [thread:$0]  %s116_s9, 256, %s118_s11, [#allocation3], %s180_s12, %s180_s12, %s181_s13  }
 0x117   :  { %177 = dma.done.wait [#allocation3], 256  }
 0x118   :  { %178 = vsyncadd [#allocation3], 4294967040 }
 0x119   :  { %128 = vsyncpa [#allocation3], 1 }

</bundles_post_ra>
